<compile_context>
chip_gen: v5e
topology: v5e:2x2
jax: 0.10.0
libtpu: 0.0.40
codegen_flags: <defaults>
</compile_context>

<pallas_src>
import functools
import math

import jax
import jax.numpy as jnp
from jax.experimental import pallas as pl
from jax.experimental.pallas import tpu as pltpu


def _build_pe_table(num_features: int, seq_len: int) -> jnp.ndarray:
    """Sinusoidal PE rows for positions [0, seq_len); mirrors the torch buffer."""
    position = jnp.arange(0, seq_len, dtype=jnp.float32)[:, None]            # (S, 1)
    div_term = jnp.exp(
        jnp.arange(0, num_features, 2, dtype=jnp.float32)
        * (-math.log(10000.0) / num_features)
    )                                                                         # (F/2,)
    args = position * div_term                                                # (S, F/2)
    pe = jnp.zeros((seq_len, num_features), dtype=jnp.float32)
    pe = pe.at[:, 0::2].set(jnp.sin(args))
    pe = pe.at[:, 1::2].set(jnp.cos(args))
    return pe


def _pe_add_kernel(x_ref, pe_ref, o_ref, *, batch: int, num_features: int):
    # x_ref / o_ref : (tile_s, B*F)  lane-dense seq rows (batch folded into lanes)
    # pe_ref        : (tile_s, F)    per-position encoding (f32)
    pe = pe_ref[...]                                     # reused for every batch slice
    for b in range(batch):                               # static unroll over batch
        sl = slice(b * num_features, (b + 1) * num_features)
        o_ref[:, sl] = (x_ref[:, sl].astype(jnp.float32) + pe).astype(o_ref.dtype)


def positional_encoding(x: jnp.ndarray, *, max_len: int = 500,
                        tile_s: int | None = None,
                        force_pallas: bool = False) -> jnp.ndarray:
    """x: (S, B, F) float. Returns x + pe[:S] broadcast over the batch axis."""
    S, B, F = x.shape
    assert S <= max_len, "sequence length exceeds max_len"

    itemsize = jnp.dtype(x.dtype).itemsize
    pe = _build_pe_table(F, S)                           # (S, F) f32, <= max_len*F*4 B

    # Tiny inputs: kernel launch / per-step overhead dominates -> plain XLA add.
    if not force_pallas and x.size * itemsize < (1 << 20):
        return (x.astype(jnp.float32) + pe[:, None, :]).astype(x.dtype)

    BF = B * F
    row_bytes = BF * itemsize                            # one seq row in the (S, B*F) view
    pack = max(8, 32 // itemsize)                        # sublane packing: 8 f32 / 16 bf16

    # Generation-aware VMEM budget (v7x: 64 MiB per core, v5e/v6e: 128 MiB).
    try:
        vmem_cap = int(pltpu.get_tpu_info().vmem_capacity_bytes)
    except Exception:
        vmem_cap = 64 << 20                              # conservative fallback (v7x)
    budget = (vmem_cap * 5) // 8                         # ~40 MiB v7x, ~80 MiB v5e/v6e

    if tile_s is None:
        # Live VMEM/step ~= 2 double-buffered x tiles (in + out) + small pe tiles.
        tile_s = max(1, (budget // 5) // max(row_bytes, 1))
        # Keep >= ~4 grid steps (2 per v7x TensorCore) for DMA/compute overlap,
        # but never shrink a tile below ~512 KiB just to add steps.
        min_rows = max(pack, (1 << 19) // max(row_bytes, 1))
        quarter = pl.cdiv(S, 4)
        if quarter >= min_rows:
            tile_s = min(tile_s, quarter)
    tile_s = int(tile_s)
    if tile_s >= S:
        tile_s = S                                       # single block == full seq axis
    else:
        tile_s = max(pack, (tile_s // pack) * pack)      # sublane-aligned tile
    grid_s = pl.cdiv(S, tile_s)                          # partial last block: OOB stores dropped

    live = 4 * tile_s * row_bytes + 2 * tile_s * F * 4 + (2 << 20)
    vmem_limit = int(max(32 << 20, live))
    vmem_limit = int(min(vmem_limit, max(live, vmem_cap - (4 << 20))))

    x2 = x.reshape(S, BF)                                # zero-copy view (row-major contiguous)

    kernel = functools.partial(_pe_add_kernel, batch=B, num_features=F)
    out2 = pl.pallas_call(
        kernel,
        out_shape=jax.ShapeDtypeStruct((S, BF), x.dtype),
        grid_spec=pltpu.PrefetchScalarGridSpec(
            num_scalar_prefetch=0,
            grid=(grid_s,),
            in_specs=[
                pl.BlockSpec((tile_s, BF), lambda i: (i, 0)),   # x rows, lane-dense
                pl.BlockSpec((tile_s, F), lambda i: (i, 0)),    # per-position PE slab
            ],
            out_specs=pl.BlockSpec((tile_s, BF), lambda i: (i, 0)),
        ),
        input_output_aliases={0: 0},                     # reuse the x2 buffer for the output
        compiler_params=pltpu.CompilerParams(
            dimension_semantics=("parallel",),
            vmem_limit_bytes=vmem_limit,
        ),
    )(x2, pe)

    return out2.reshape(S, B, F)


if __name__ == "__main__":
    MAX_LEN = 500

    # Shapes implied by the module's forward: (seq_len, batch, num_features)
    S, B, F = 8, 2, 32
    key = jax.random.PRNGKey(0)
    x = jax.random.normal(key, (S, B, F), dtype=jnp.float32)

    # Force the Pallas path so the kernel is actually exercised at this size.
    out = positional_encoding(x, max_len=MAX_LEN, force_pallas=True)
    out = jax.block_until_ready(out)

    ref = x + _build_pe_table(F, S)[:, None, :]
    assert out.shape == (S, B, F)
    assert jnp.allclose(out, ref, atol=1e-5, rtol=1e-5), "mismatch vs reference"

    # Second check: lane-dense B*F >= 128, multi-step grid and a partial final
    # block (S not a multiple of tile_s) — exercises the no-pad remainder path.
    S2, B2, F2 = 50, 4, 64
    x_big = jax.random.normal(jax.random.PRNGKey(1), (S2, B2, F2), dtype=jnp.float32)
    out2 = positional_encoding(x_big, max_len=MAX_LEN, force_pallas=True, tile_s=16)
    out2 = jax.block_until_ready(out2)
    ref2 = x_big + _build_pe_table(F2, S2)[:, None, :]
    assert jnp.allclose(out2, ref2, atol=1e-5, rtol=1e-5), "mismatch vs reference (tiled)"

    print("KERNEL_OK")
</pallas_src>

<mosaic_0001>
module attributes {stable_mosaic.version = 11 : i64} {
  func.func @_pe_add_kernel(%arg0: i32, %arg1: memref<8x64xf32, #tpu.memory_space<vmem>>, %arg2: memref<8x32xf32, #tpu.memory_space<vmem>>, %arg3: memref<8x64xf32, #tpu.memory_space<vmem>>) attributes {dimension_semantics = [#tpu.dimension_semantics<parallel>], iteration_bounds = array<i64: 1>, scalar_prefetch = 0 : i64, scratch_operands = 0 : i64, tpu.core_type = #tpu.core_type<tc>, window_params = [{transform_indices = @transform_0, window_bounds = array<i64: 8, 64>}, {transform_indices = @transform_1, window_bounds = array<i64: 8, 32>}, {transform_indices = @transform_2, window_bounds = array<i64: 8, 64>}]} {
    %c0 = arith.constant 0 : index
    %c0_0 = arith.constant 0 : index
    %0 = vector.load %arg2[%c0, %c0_0] : memref<8x32xf32, #tpu.memory_space<vmem>>, vector<8x32xf32>
    %c0_1 = arith.constant 0 : index
    %c0_2 = arith.constant 0 : index
    %1 = vector.load %arg1[%c0_1, %c0_2] : memref<8x64xf32, #tpu.memory_space<vmem>>, vector<8x32xf32>
    %2 = arith.addf %1, %0 : vector<8x32xf32>
    %c0_3 = arith.constant 0 : index
    %c0_4 = arith.constant 0 : index
    %3 = vector.load %arg3[%c0_3, %c0_4] : memref<8x64xf32, #tpu.memory_space<vmem>>, vector<8x32xf32>
    tpu.vector_store %arg3[%c0_3, %c0_4], %2 {strides = array<i32>} : memref<8x64xf32, #tpu.memory_space<vmem>>, vector<8x32xf32>,
    %c0_5 = arith.constant 0 : index
    %c32 = arith.constant 32 : index
    %4 = vector.load %arg1[%c0_5, %c32] : memref<8x64xf32, #tpu.memory_space<vmem>>, vector<8x32xf32>
    %5 = arith.addf %4, %0 : vector<8x32xf32>
    %c0_6 = arith.constant 0 : index
    %c32_7 = arith.constant 32 : index
    %6 = vector.load %arg3[%c0_6, %c32_7] : memref<8x64xf32, #tpu.memory_space<vmem>>, vector<8x32xf32>
    tpu.vector_store %arg3[%c0_6, %c32_7], %5 {strides = array<i32>} : memref<8x64xf32, #tpu.memory_space<vmem>>, vector<8x32xf32>,
    return
  }
  func.func @transform_0(%arg0: i32) -> (i32, i32) {
    %c0_i32 = arith.constant 0 : i32
    %c0_i32_0 = arith.constant 0 : i32
    return %arg0, %c0_i32 : i32, i32
  }
  func.func @transform_1(%arg0: i32) -> (i32, i32) {
    %c0_i32 = arith.constant 0 : i32
    %c0_i32_0 = arith.constant 0 : i32
    return %arg0, %c0_i32 : i32, i32
  }
  func.func @transform_2(%arg0: i32) -> (i32, i32) {
    %c0_i32 = arith.constant 0 : i32
    %c0_i32_0 = arith.constant 0 : i32
    return %arg0, %c0_i32 : i32, i32
  }
}

</mosaic_0001>

<bundles_post_ra>
// kernel: tpu_custom_call.1
= control target key start
LH: loop header
LB: loop body
LE: loop exit
PB: predicated region body
PF: predicated region fallthrough
CT: control target
= control target key end

     0   :  { %7 = vsyncpa [#allocation3], 0  ;;  %s138_s0 = inlined_call_operand.hbm [shape: f32[8,64], index: 0, kind: input, shape index: {}, may-alias: {0,2}]   ;;  %s139_s1 = inlined_call_operand.vmem [shape: f32[8,32], index: 1, kind: input, shape index: {}]   ;;  %s140_s2 = inlined_call_operand.hbm [shape: f32[8,64], index: 2, kind: output, shape index: {}, may-alias: {0,2}]  }
   0x1   :  { %8 = vsyncpa [#allocation4], 0  ;;  %s14_s11 = sshll.u32 %s138_s0, 4  ;;  %s111_s12 = smov [#allocation2]   ;;  %s15_s11 = int_to_ptr.hbm [resolvable:$true] %s14_s11 }
   0x2   :  { %s16_s13 = sshll.u32 %s111_s12, 4  ;;  %s17_s13 = int_to_ptr.vmem [resolvable:$true] %s16_s13 }
   0x3   :  { %19 = dma.hbm_to_vmem [thread:$0]  %s15_s11, 128, %s17_s13, [#allocation3]  }
   0x4   :  { %107 = dma.done.wait [#allocation3], 128  }
   0x5   :  { %108 = vsyncadd [#allocation3], 4294967168  ;;  %v26_v0 = vld [vmem:[%s139_s1] sm:$0xff]  ;;  %vm29_vm0 = vcmask 261120   ;;  %s112_s16 = smov 32   ;;  %s113_s17 = smov [#allocation5]  }
   0x6   :  { %v27_v1 = vld [vmem:[#allocation2] sm:$0xff]  ;;  %33 = vrot.lane.b32.xlu0 %v26_v0, %s112_s16  ;;  %s44_s18 = sshll.u32 %s113_s17, 4  ;;  %s46_s20 = sshll.u32 %s140_s2, 4  ;;  %vm37_vm1 = vcmask 523520   ;;  %s45_s18 = int_to_ptr.vmem [resolvable:$true] %s44_s18  ;;  %s47_s20 = int_to_ptr.hbm [resolvable:$true] %s46_s20 }
   0x7   :  { %v28_v2 = vadd.f32 %v27_v1, %v26_v0 }
   0x9   :  { %30 = vst.msk [vmem:[#allocation5] sm:$0xff] %vm29_vm0, %v28_v2 }
  0x78   :  { %v34_v3 = vpop.permute.xlu0 %33 }
  0x79   :  { %v36_v4 = vadd.f32 %v34_v3, %v27_v1 }
  0x7b   :  { %38 = vst.msk [vmem:[#allocation5] sm:$0xff] %vm37_vm1, %v36_v4 }
  0x7c   :  { %49 = dma.vmem_to_hbm [thread:$0]  %s45_s18, 128, %s47_s20, [#allocation4]  }
  0x7d   :  { %109 = dma.done.wait [#allocation4], 128  }
  0x7e   :  { %110 = vsyncadd [#allocation4], 4294967168 }
  0x7f   :  { %54 = vsyncpa [#allocation3], 1 }
  0x80   :  { %55 = vsyncpa [#allocation4], 1 }

</bundles_post_ra>
